<compile_context>
chip_gen: v7x
topology: tpu7x:2x2x1
jax: 0.10.0
libtpu: 0.0.40
codegen_flags: <defaults>
</compile_context>

<pallas_src>
import functools

import jax
import jax.numpy as jnp
from jax.experimental import pallas as pl
from jax.experimental.pallas import tpu as pltpu


# ----------------------------------------------------------------------------
# Generation-aware VMEM budget
# ----------------------------------------------------------------------------
def _detect_vmem_capacity_bytes():
    try:
        info = pltpu.get_tpu_info()
        cap = int(getattr(info, "vmem_capacity_bytes", 0) or 0)
        if cap > 0:
            return cap
    except Exception:
        pass
    return 64 * 1024 * 1024  # conservative fallback: v7x has 64 MiB per TensorCore


_VMEM_CAPACITY_BYTES = _detect_vmem_capacity_bytes()
# Leave headroom: 48 MiB on v7x (64 MiB physical), 96 MiB on v5e/v6e (128 MiB).
_VMEM_LIMIT_BYTES = min((_VMEM_CAPACITY_BYTES * 3) // 4, 96 * 1024 * 1024)


# ----------------------------------------------------------------------------
# Pallas kernels
# ----------------------------------------------------------------------------
def _matmul_affine_kernel(a_ref, b_ref, s_ref, c_ref, o_ref, *, relu):
    # o = maybe_relu((a @ dequant(b)) * scale + bias); scale/bias broadcast over rows.
    b = b_ref[...]
    if b.dtype != jnp.bfloat16:
        # int8 weight-only quant: per-column dequant scale is folded into s_ref.
        b = b.astype(jnp.bfloat16)
    acc = jnp.dot(a_ref[...], b, preferred_element_type=jnp.float32)
    out = acc * s_ref[...] + c_ref[...]
    if relu:
        out = jnp.maximum(out, 0.0)
    o_ref[...] = out.astype(o_ref.dtype)


def _matmul_affine_res_kernel(a_ref, b_ref, s_ref, c_ref, r_ref, o_ref, *, relu):
    # Same as above but with the residual identity (streamed as bf16) fused in:
    # o = maybe_relu((a @ dequant(b)) * scale + bias + identity).
    b = b_ref[...]
    if b.dtype != jnp.bfloat16:
        b = b.astype(jnp.bfloat16)
    acc = jnp.dot(a_ref[...], b, preferred_element_type=jnp.float32)
    out = acc * s_ref[...] + c_ref[...] + r_ref[...].astype(jnp.float32)
    if relu:
        out = jnp.maximum(out, 0.0)
    o_ref[...] = out.astype(o_ref.dtype)


def _pick_tm(M):
    # Bounded tile (<=256); prefer a tile that leaves >=2 row blocks so both
    # v7x TensorCores get work. Final fallback returns M itself (only legal
    # because it then equals the full array dim; only hit for tiny M like 2).
    for t in (256, 128, 64, 32, 16, 8):
        if M % t == 0 and M // t >= 2:
            return t
    for t in (256, 128, 64, 32, 16, 8):
        if M % t == 0:
            return t
    return M


_TN_CANDIDATES = (3200, 2048, 1024, 512, 256, 128)  # all multiples of 128


def _pick_tn(N, K, m_blocks, b_itemsize):
    # Cap the streamed weight tile so deep buffering + in-kernel int8->bf16
    # dequant comfortably fits scoped VMEM on every generation:
    #   v5e/v6e (96 MiB limit) -> 9.6 MiB cap -> fc tn=3200 (8 steps)
    #   v7x     (48 MiB limit) -> 4.8 MiB cap -> fc tn=1024
    byte_cap = _VMEM_LIMIT_BYTES // 10
    cands = [t for t in _TN_CANDIDATES
             if N % t == 0 and K * t * b_itemsize <= byte_cap]
    if not cands:
        return N  # small N (e.g. 64): full-dim (lane-masked) block
    for t in cands:  # largest tile that still leaves >=2 grid blocks (megacore)
        if m_blocks * (N // t) >= 2:
            return t
    return cands[0]


def matmul_affine(a, b, scale, bias, relu, residual=None, out_dtype=jnp.bfloat16):
    """(M,K) bf16 @ (K,N) int8/bf16 with f32 accumulation, fused per-column
    affine (folded BN + dequant scale / fc bias), optional fused residual add
    (bf16 stream), optional ReLU. Output dtype defaults to bf16."""
    M, K = a.shape
    K2, N = b.shape
    assert K == K2
    tm = _pick_tm(M)
    tn = _pick_tn(N, K, M // tm, jnp.dtype(b.dtype).itemsize)

    a = a.astype(jnp.bfloat16)
    s2 = scale.reshape(1, N).astype(jnp.float32)
    c2 = bias.reshape(1, N).astype(jnp.float32)

    b_spec = pl.BlockSpec((K, tn), lambda i, j: (0, j))
    if N // tn >= 4:
        # fc weight stream is pure DMA (per-tile compute is tiny); 3-deep
        # buffering lets the weight DMAs chain back-to-back.
        try:
            b_spec = pl.BlockSpec((K, tn), lambda i, j: (0, j),
                                  pipeline_mode=pl.Buffered(3))
        except (TypeError, AttributeError):
            b_spec = pl.BlockSpec((K, tn), lambda i, j: (0, j))

    in_specs = [
        pl.BlockSpec((tm, K), lambda i, j: (i, 0)),
        b_spec,
        pl.BlockSpec((1, tn), lambda i, j: (0, j)),
        pl.BlockSpec((1, tn), lambda i, j: (0, j)),
    ]
    args = [a, b, s2, c2]
    if residual is not None:
        assert residual.shape == (M, N)
        in_specs.append(pl.BlockSpec((tm, tn), lambda i, j: (i, j)))
        args.append(residual.astype(jnp.bfloat16))
        kernel = functools.partial(_matmul_affine_res_kernel, relu=relu)
    else:
        kernel = functools.partial(_matmul_affine_kernel, relu=relu)

    return pl.pallas_call(
        kernel,
        out_shape=jax.ShapeDtypeStruct((M, N), out_dtype),
        grid=(M // tm, N // tn),
        in_specs=in_specs,
        out_specs=pl.BlockSpec((tm, tn), lambda i, j: (i, j)),
        compiler_params=pltpu.CompilerParams(
            dimension_semantics=("parallel", "parallel"),
            vmem_limit_bytes=_VMEM_LIMIT_BYTES,
        ),
    )(*args)


def _maxpool3x3_kernel(x_ref, o_ref):
    # x_ref: (1, Hp, Wp, C) padded input; o_ref: (1, Hp-2, Wp-2, C) = stride-1
    # 3x3 window max. Stride-2 subsampling happens outside (pure slicing glue).
    # TODO(synk): move the stride-2 pick in-kernel (sublane-strided reads) to
    # drop the 4x over-compute; negligible at this size vs. the weight streams.
    x = x_ref[...]
    _, Hp, Wp, _ = x.shape
    Ho, Wo = Hp - 2, Wp - 2
    m = x[:, 0:Ho, 0:Wo, :]
    for di in range(3):
        for dj in range(3):
            if di == 0 and dj == 0:
                continue
            m = jnp.maximum(m, x[:, di:di + Ho, dj:dj + Wo, :])
    o_ref[...] = m


def maxpool_3x3_s2_p1(x):
    """MaxPool2d(kernel=3, stride=2, padding=1) on NHWC bf16 input."""
    N, H, W, C = x.shape
    neg = float(jnp.finfo(jnp.bfloat16).min)
    xp = jnp.pad(x, ((0, 0), (1, 1), (1, 1), (0, 0)), constant_values=neg)
    Hp, Wp = H + 2, W + 2
    full = pl.pallas_call(
        _maxpool3x3_kernel,
        out_shape=jax.ShapeDtypeStruct((N, Hp - 2, Wp - 2, C), x.dtype),
        grid=(N,),
        in_specs=[pl.BlockSpec((1, Hp, Wp, C), lambda n: (n, 0, 0, 0))],
        out_specs=pl.BlockSpec((1, Hp - 2, Wp - 2, C), lambda n: (n, 0, 0, 0)),
        compiler_params=pltpu.CompilerParams(
            dimension_semantics=("parallel",),
            vmem_limit_bytes=_VMEM_LIMIT_BYTES,
        ),
    )(xp)
    return full[:, ::2, ::2, :]  # stride-2 pick (glue)


def _global_avgpool_kernel(x_ref, o_ref):
    x = x_ref[...].astype(jnp.float32)           # (N, H, W, C)
    _, H, W, _ = x.shape
    o_ref[...] = jnp.sum(x, axis=(1, 2)) * (1.0 / float(H * W))


def global_avgpool(x):
    N, H, W, C = x.shape
    return pl.pallas_call(
        _global_avgpool_kernel,
        out_shape=jax.ShapeDtypeStruct((N, C), jnp.float32),
        grid=(1,),
        in_specs=[pl.BlockSpec((N, H, W, C), lambda i: (0, 0, 0, 0))],
        out_specs=pl.BlockSpec((N, C), lambda i: (0, 0)),
        compiler_params=pltpu.CompilerParams(
            vmem_limit_bytes=_VMEM_LIMIT_BYTES,
        ),
    )(x)


# ----------------------------------------------------------------------------
# JAX glue: im2col + conv-bn wrapper + bottleneck blocks
# ----------------------------------------------------------------------------
def im2col(x, kh, kw, stride, pad):
    """NHWC -> (N*Ho*Wo, kh*kw*C), column order (ki, kj) outer / channel inner."""
    # TODO(synk): fold patch extraction into the matmul grid (kh*kw reduction
    # axis with shifted block origins + VMEM accumulator) to avoid the HBM
    # duplication; at 64x64 input the duplicated cols are small vs. weights.
    N, H, W, C = x.shape
    if pad > 0:
        x = jnp.pad(x, ((0, 0), (pad, pad), (pad, pad), (0, 0)))
    Ho = (H + 2 * pad - kh) // stride + 1
    Wo = (W + 2 * pad - kw) // stride + 1
    patches = []
    for i in range(kh):
        for j in range(kw):
            patches.append(
                x[:, i:i + (Ho - 1) * stride + 1:stride,
                  j:j + (Wo - 1) * stride + 1:stride, :])
    cols = patches[0] if len(patches) == 1 else jnp.concatenate(patches, axis=-1)
    return cols.reshape(N * Ho * Wo, kh * kw * C), Ho, Wo


def conv_bn(x, params, stride, pad, relu, residual=None):
    """Conv (int8 weight) + folded BN (+ optional fused residual) + opt ReLU."""
    w, scale, bias = params                      # w: (kh, kw, Cin, Cout), int8
    kh, kw, cin, cout = w.shape
    N = x.shape[0]
    cols, Ho, Wo = im2col(x, kh, kw, stride, pad)
    r = None
    if residual is not None:
        assert residual.shape == (N, Ho, Wo, cout)
        r = residual.reshape(N * Ho * Wo, cout)
    y = matmul_affine(cols, w.reshape(kh * kw * cin, cout), scale, bias, relu,
                      residual=r)
    return y.reshape(N, Ho, Wo, cout)


def bottleneck(x, blk):
    stride = blk["stride"]
    out = conv_bn(x, blk["conv1"], stride=1, pad=0, relu=True)
    out = conv_bn(out, blk["conv2"], stride=stride, pad=1, relu=True)
    if "downsample" in blk:
        identity = conv_bn(x, blk["downsample"], stride=stride, pad=0, relu=False)
    else:
        identity = x
    # conv3 + BN + residual add + ReLU, all fused in one Pallas matmul epilogue.
    out = conv_bn(out, blk["conv3"], stride=1, pad=0, relu=True, residual=identity)
    return out


# ----------------------------------------------------------------------------
# Deterministic synthetic parameters (shapes match torchvision resnet50 with
# conv1: 8->64 and fc: 2048->25600; BatchNorm folded to scale/bias, eval mode).
# All weights stored int8 (per-output-channel weight-only quantization);
# dequant scale folded into the f32 affine epilogue.
# ----------------------------------------------------------------------------
def _quantize_per_col(w2d):
    amax = jnp.maximum(jnp.max(jnp.abs(w2d), axis=0), 1e-8)
    qs = amax / 127.0
    wq = jnp.clip(jnp.round(w2d / qs), -127.0, 127.0).astype(jnp.int8)
    return wq, qs


def init_conv_bn(key, kh, kw, cin, cout):
    k1, k2, k3, k4, k5 = jax.random.split(key, 5)
    fan_in = kh * kw * cin
    w = jax.random.normal(k1, (kh, kw, cin, cout), jnp.float32) * jnp.sqrt(2.0 / fan_in)
    gamma = 1.0 + 0.1 * jax.random.normal(k2, (cout,), jnp.float32)
    beta = 0.1 * jax.random.normal(k3, (cout,), jnp.float32)
    mean = 0.1 * jax.random.normal(k4, (cout,), jnp.float32)
    var = 1.0 + jnp.abs(0.1 * jax.random.normal(k5, (cout,), jnp.float32))
    eps = 1e-5
    scale = gamma / jnp.sqrt(var + eps)
    bias = beta - mean * scale
    wq, qs = _quantize_per_col(w.reshape(fan_in, cout))
    return (wq.reshape(kh, kw, cin, cout), scale * qs, bias)


def init_resnet50_params(key, in_channels=8, num_classes=25600):
    keys = iter(jax.random.split(key, 128))
    params = {"conv1": init_conv_bn(next(keys), 7, 7, in_channels, 64)}
    layer_cfg = [(64, 3, 1), (128, 4, 2), (256, 6, 2), (512, 3, 2)]
    inplanes = 64
    layers = []
    for planes, nblocks, stride in layer_cfg:
        blocks = []
        for b in range(nblocks):
            s = stride if b == 0 else 1
            blk = {
                "stride": s,
                "conv1": init_conv_bn(next(keys), 1, 1, inplanes, planes),
                "conv2": init_conv_bn(next(keys), 3, 3, planes, planes),
                "conv3": init_conv_bn(next(keys), 1, 1, planes, planes * 4),
            }
            if s != 1 or inplanes != planes * 4:
                blk["downsample"] = init_conv_bn(next(keys), 1, 1, inplanes, planes * 4)
            blocks.append(blk)
            inplanes = planes * 4
        layers.append(blocks)
    params["layers"] = layers
    kw_, kb_ = jax.random.split(next(keys))
    fc_w = jax.random.normal(kw_, (2048, num_classes), jnp.float32) * jnp.sqrt(1.0 / 2048)
    fc_wq, fc_qs = _quantize_per_col(fc_w)
    params["fc_w"] = fc_wq                       # int8 (2048, 25600)
    params["fc_scale"] = fc_qs                   # f32 per-column dequant scale
    params["fc_b"] = 0.01 * jax.random.normal(kb_, (num_classes,), jnp.float32)
    return params


# ----------------------------------------------------------------------------
# Forward pass
# ----------------------------------------------------------------------------
def resnet50_forward(params, x_nchw):
    # NCHW f32 -> NHWC bf16 (all intermediate activations kept bf16)
    x = jnp.transpose(x_nchw, (0, 2, 3, 1)).astype(jnp.bfloat16)
    x = conv_bn(x, params["conv1"], stride=2, pad=3, relu=True)   # 7x7 s2 p3 + bn + relu
    x = maxpool_3x3_s2_p1(x)                                      # 3x3 s2 p1
    for blocks in params["layers"]:
        for blk in blocks:
            x = bottleneck(x, blk)
    pooled = global_avgpool(x)                                    # (N, 2048) f32
    logits = matmul_affine(pooled, params["fc_w"], params["fc_scale"],
                           params["fc_b"], relu=False, out_dtype=jnp.float32)
    return logits                                                 # (N, 25600)


if __name__ == "__main__":
    key = jax.random.PRNGKey(0)
    kp, kx = jax.random.split(key)
    params = init_resnet50_params(kp)
    # PyTorch-style NCHW input: batch=2, channels=8 (as required by modified conv1),
    # spatial 64x64 so the final feature map before avgpool is 2x2x2048.
    x = jax.random.normal(kx, (2, 8, 64, 64), jnp.float32)
    out = resnet50_forward(params, x)
    out = jax.block_until_ready(out)
    assert out.shape == (2, 25600), out.shape
    assert bool(jnp.all(jnp.isfinite(out)))
    print("KERNEL_OK")
</pallas_src>

<mosaic_0001>
module attributes {stable_mosaic.version = 11 : i64} {
  func.func @_matmul_affine_kernel(%arg0: i32, %arg1: i32, %arg2: memref<256x392xbf16, #tpu.memory_space<vmem>>, %arg3: memref<392x64xi8, #tpu.memory_space<vmem>>, %arg4: memref<1x64xf32, #tpu.memory_space<vmem>>, %arg5: memref<1x64xf32, #tpu.memory_space<vmem>>, %arg6: memref<256x64xbf16, #tpu.memory_space<vmem>>) attributes {dimension_semantics = [#tpu.dimension_semantics<parallel>, #tpu.dimension_semantics<parallel>], iteration_bounds = array<i64: 8, 1>, scalar_prefetch = 0 : i64, scratch_operands = 0 : i64, tpu.core_type = #tpu.core_type<tc>, window_params = [{transform_indices = @transform_0, window_bounds = array<i64: 256, 392>}, {transform_indices = @transform_1, window_bounds = array<i64: 392, 64>}, {transform_indices = @transform_2, window_bounds = array<i64: 1, 64>}, {transform_indices = @transform_3, window_bounds = array<i64: 1, 64>}, {transform_indices = @transform_4, window_bounds = array<i64: 256, 64>}]} {
    %c0 = arith.constant 0 : index
    %c0_0 = arith.constant 0 : index
    %0 = vector.load %arg3[%c0, %c0_0] : memref<392x64xi8, #tpu.memory_space<vmem>>, vector<392x64xi8>
    %1 = arith.sitofp %0 : vector<392x64xi8> to vector<392x64xbf16>
    %c0_1 = arith.constant 0 : index
    %c0_2 = arith.constant 0 : index
    %2 = vector.load %arg2[%c0_1, %c0_2] : memref<256x392xbf16, #tpu.memory_space<vmem>>, vector<256x392xbf16>
    %cst = arith.constant dense<0.000000e+00> : vector<256x64xf32>
    %3 = tpu.matmul %2, %1, %cst {dimension_numbers = #tpu.dot_dimension_numbers<[1], [0], [0], [1], [0, 0, 1, 1], [], []>} : vector<256x392xbf16>, vector<392x64xbf16>, vector<256x64xf32> -> vector<256x64xf32>
    %c0_3 = arith.constant 0 : index
    %c0_4 = arith.constant 0 : index
    %4 = vector.load %arg4[%c0_3, %c0_4] : memref<1x64xf32, #tpu.memory_space<vmem>>, vector<1x64xf32>
    %5 = vector.broadcast %4 : vector<1x64xf32> to vector<256x64xf32>
    %6 = arith.mulf %3, %5 : vector<256x64xf32>
    %c0_5 = arith.constant 0 : index
    %c0_6 = arith.constant 0 : index
    %7 = vector.load %arg5[%c0_5, %c0_6] : memref<1x64xf32, #tpu.memory_space<vmem>>, vector<1x64xf32>
    %8 = vector.broadcast %7 : vector<1x64xf32> to vector<256x64xf32>
    %9 = arith.addf %6, %8 : vector<256x64xf32>
    %cst_7 = arith.constant 0.000000e+00 : f32
    %10 = vector.broadcast %cst_7 : f32 to vector<256x64xf32>
    %11 = arith.maximumf %9, %10 : vector<256x64xf32>
    %12 = arith.truncf %11 : vector<256x64xf32> to vector<256x64xbf16>
    %c0_8 = arith.constant 0 : index
    %c0_9 = arith.constant 0 : index
    %13 = vector.load %arg6[%c0_8, %c0_9] : memref<256x64xbf16, #tpu.memory_space<vmem>>, vector<256x64xbf16>
    tpu.vector_store %arg6[%c0_8, %c0_9], %12 {strides = array<i32>} : memref<256x64xbf16, #tpu.memory_space<vmem>>, vector<256x64xbf16>,
    return
  }
  func.func @transform_0(%arg0: i32, %arg1: i32) -> (i32, i32) {
    %c0_i32 = arith.constant 0 : i32
    %c0_i32_0 = arith.constant 0 : i32
    return %arg0, %c0_i32 : i32, i32
  }
  func.func @transform_1(%arg0: i32, %arg1: i32) -> (i32, i32) {
    %c0_i32 = arith.constant 0 : i32
    %c0_i32_0 = arith.constant 0 : i32
    return %c0_i32, %arg1 : i32, i32
  }
  func.func @transform_2(%arg0: i32, %arg1: i32) -> (i32, i32) {
    %c0_i32 = arith.constant 0 : i32
    %c0_i32_0 = arith.constant 0 : i32
    return %c0_i32, %arg1 : i32, i32
  }
  func.func @transform_3(%arg0: i32, %arg1: i32) -> (i32, i32) {
    %c0_i32 = arith.constant 0 : i32
    %c0_i32_0 = arith.constant 0 : i32
    return %c0_i32, %arg1 : i32, i32
  }
  func.func @transform_4(%arg0: i32, %arg1: i32) -> (i32, i32) {
    %c0_i32 = arith.constant 0 : i32
    return %arg0, %arg1 : i32, i32
  }
}

</mosaic_0001>

<bundles_post_ra>
// kernel: tpu_custom_call.1
= control target key start
LH: loop header
LB: loop body
LE: loop exit
PB: predicated region body
PF: predicated region fallthrough
CT: control target
= control target key end

     0   :  { %s2113_s15 = smov 0   ;;  %s2115_s16 = smov 0   ;;  %s2531_s0 = inlined_call_operand.vmem [shape: bf16[2048,392], index: 0, kind: input, shape index: {}]   ;;  %s2532_s1 = inlined_call_operand.vmem [shape: s8[392,64], index: 1, kind: input, shape index: {}]   ;;  %s2533_s2 = inlined_call_operand.vmem [shape: f32[1,64], index: 2, kind: input, shape index: {}]   ;;  %s2534_s3 = inlined_call_operand.vmem [shape: f32[1,64], index: 3, kind: input, shape index: {}]   ;;  %s2535_s4 = inlined_call_operand.vmem [shape: bf16[2048,64], index: 4, kind: output, shape index: {}]  }
   0x1   :  { %s2117_s17 = smov 0  }
   0x2 LB: > { %s26_s18 = sadd.s32 1, %s2081_s16  ;;  %p1650_p0 = scmp.ge.s32.totalorder %s2085_s17, 1  ;;  %s2085_s17 = sphi %s2117_s17, %s14_s17   ;;  %s2081_s16 = sphi %s2115_s16, %s2537_s16   ;;  %s2077_s15 = sphi %s2113_s15, %s2536_s15  }
   0x3   : > { %p28_p1 = scmp.ge.s32.totalorder %s26_s18, 8  ;;  %p203_p2 = scmp.lt.s32.totalorder %s2085_s17, 9 }
   0x5   : > { %s2539_s18 = smov (%p28_p1, %s26_s18), 0  ;;  %p204_p3 = pnand %p1650_p0, %p203_p2 }
   0x6   : > { %v286_v0 = vld [vmem:[%s2532_s1 + $0x20] sm:$0x3] (!%p204_p3)  ;;  %v287_v1 = vld [vmem:[%s2532_s1 + $0x22] sm:$0x3] (!%p204_p3)  ;;  %v2087_v2 = vmov (!%p204_p3), 0   ;;  %s1651_s13 = sshll.u32 (!%p204_p3), %s2077_s15, 5 }
   0x7   : > { %207 = sbr.rel (%p204_p3) target bundleno = 392 (0x188), region = 36  ;;  %1097 = vmatprep.subr.bf16.mxu1 (!%p204_p3), %v2087_v2  ;;  %v335_v3 = vunpack.c.l.s8.bf16 (!%p204_p3), %v286_v0  ;;  %v336_v4 = vunpack.c.l.s8.bf16 (!%p204_p3), %v287_v1  ;;  %v302_v5 = vld [vmem:[%s2532_s1 + $0x40] sm:$0x3] (!%p204_p3)  ;;  %v303_v6 = vld [vmem:[%s2532_s1 + $0x42] sm:$0x3] (!%p204_p3)  ;;  %p244_p4 = scmp.lt.s32.totalorder (!%p204_p3), %s1651_s13, 255 }
   0x8   : > { %v270_v7 = vld [vmem:[%s2532_s1] sm:$0x3] (!%p204_p3)  ;;  %v351_v8 = vunpack.c.l.s8.bf16 (!%p204_p3), %v302_v5  ;;  %v352_v9 = vunpack.c.l.s8.bf16 (!%p204_p3), %v303_v6  ;;  %v271_v10 = vld [vmem:[%s2532_s1 + $0x2] sm:$0x3] (!%p204_p3)  ;;  %v288_v12 = vld [vmem:[%s2532_s1 + $0x24] sm:$0x3] (!%p204_p3) }
   0x9   : > { %v319_v11 = vunpack.c.l.s8.bf16 (!%p204_p3), %v270_v7  ;;  %v289_v13 = vld [vmem:[%s2532_s1 + $0x26] sm:$0x3] (!%p204_p3)  ;;  %v1728_v14 = vcombine.low (!%p204_p3), %v335_v3, %v336_v4  ;;  %v320_v15 = vunpack.c.l.s8.bf16 (!%p204_p3), %v271_v10  ;;  %v337_v16 = vunpack.c.l.s8.bf16 (!%p204_p3), %v288_v12  ;;  %v304_v18 = vld [vmem:[%s2532_s1 + $0x44] sm:$0x3] (!%p204_p3)  ;;  %v290_v26 = vld [vmem:[%s2532_s1 + $0x28] sm:$0x3] (!%p204_p3) }
   0xa   : > { %v338_v17 = vunpack.c.l.s8.bf16 (!%p204_p3), %v289_v13  ;;  %v305_v19 = vld [vmem:[%s2532_s1 + $0x46] sm:$0x3] (!%p204_p3)  ;;  %v272_v20 = vld [vmem:[%s2532_s1 + $0x4] sm:$0x3] (!%p204_p3)  ;;  %v1736_v21 = vcombine.low (!%p204_p3), %v351_v8, %v352_v9  ;;  %v353_v22 = vunpack.c.l.s8.bf16 (!%p204_p3), %v304_v18  ;;  %v291_v27 = vld [vmem:[%s2532_s1 + $0x2a] sm:$0x3] (!%p204_p3)  ;;  %v339_v31 = vunpack.c.l.s8.bf16 (!%p204_p3), %v290_v26 }
   0xb   : > { %v354_v23 = vunpack.c.l.s8.bf16 (!%p204_p3), %v305_v19  ;;  %v273_v24 = vld [vmem:[%s2532_s1 + $0x6] sm:$0x3] (!%p204_p3)  ;;  %v321_v25 = vunpack.c.l.s8.bf16 (!%p204_p3), %v272_v20  ;;  %1830 = vmatprep.subr.bf16.mxu0 (!%p204_p3), %v1728_v14  ;;  %v1720_v28 = vcombine.low (!%p204_p3), %v319_v11, %v320_v15  ;;  %v306_v32 = vld [vmem:[%s2532_s1 + $0x48] sm:$0x3] (!%p204_p3)  ;;  %v307_v33 = vld [vmem:[%s2532_s1 + $0x4a] sm:$0x3] (!%p204_p3)  ;;  %v340_v36 = vunpack.c.l.s8.bf16 (!%p204_p3), %v291_v27 }
   0xc   : > { %v1729_v29 = vcombine.low (!%p204_p3), %v337_v16, %v338_v17  ;;  %v322_v30 = vunpack.c.l.s8.bf16 (!%p204_p3), %v273_v24  ;;  %v274_v34 = vld [vmem:[%s2532_s1 + $0x8] sm:$0x3] (!%p204_p3)  ;;  %1098 = vmatpush1.bf16.msra.mxu1 (!%p204_p3), %v1736_v21  ;;  %v355_v37 = vunpack.c.l.s8.bf16 (!%p204_p3), %v306_v32  ;;  %v356_v38 = vunpack.c.l.s8.bf16 (!%p204_p3), %v307_v33  ;;  %v275_v39 = vld [vmem:[%s2532_s1 + $0xa] sm:$0x3] (!%p204_p3)  ;;  %v292_v40 = vld [vmem:[%s2532_s1 + $0x2c] sm:$0x3] (!%p204_p3) }
   0xd   : > { %v1737_v35 = vcombine.low (!%p204_p3), %v353_v22, %v354_v23  ;;  %v293_v41 = vld [vmem:[%s2532_s1 + $0x2e] sm:$0x3] (!%p204_p3)  ;;  %1831 = vmatpush3.bf16.msra.mxu0 (!%p204_p3), %v1720_v28  ;;  %1099 = vmatprep.subr.bf16.mxu1 (!%p204_p3), %v2087_v2  ;;  %v323_v43 = vunpack.c.l.s8.bf16 (!%p204_p3), %v274_v34  ;;  %v324_v44 = vunpack.c.l.s8.bf16 (!%p204_p3), %v275_v39  ;;  %v308_v45 = vld [vmem:[%s2532_s1 + $0x4c] sm:$0x3] (!%p204_p3)  ;;  %v1730_v47 = vcombine.low (!%p204_p3), %v339_v31, %v340_v36  ;;  %v294_v52 = vld [vmem:[%s2532_s1 + $0x30] sm:$0x3] (!%p204_p3) }
   0xe   : > { %v1721_v42 = vcombine.low %v321_v25, %v322_v30  ;;  %v309_v46 = vld [vmem:[%s2532_s1 + $0x4e] sm:$0x3]  ;;  %1832 = vmatprep.subr.bf16.mxu0 %v1729_v29  ;;  %v341_v48 = vunpack.c.l.s8.bf16 %v292_v40  ;;  %v342_v49 = vunpack.c.l.s8.bf16 %v293_v41  ;;  %v276_v50 = vld [vmem:[%s2532_s1 + $0xc] sm:$0x3]  ;;  %v295_v53 = vld [vmem:[%s2532_s1 + $0x32] sm:$0x3]  ;;  %v1738_v54 = vcombine.low %v355_v37, %v356_v38 }
   0xf   : > { %v277_v51 = vld [vmem:[%s2532_s1 + $0xe] sm:$0x3]  ;;  %v357_v55 = vunpack.c.l.s8.bf16 %v308_v45  ;;  %v358_v56 = vunpack.c.l.s8.bf16 %v309_v46  ;;  %v1722_v57 = vcombine.low %v323_v43, %v324_v44  ;;  %v325_v58 = vunpack.c.l.s8.bf16 %v276_v50  ;;  %v310_v60 = vld [vmem:[%s2532_s1 + $0x50] sm:$0x3]  ;;  %v311_v61 = vld [vmem:[%s2532_s1 + $0x52] sm:$0x3] }
  0x10   : > { %1100 = vmatpush1.bf16.msra.mxu1 %v1737_v35  ;;  %v326_v59 = vunpack.c.l.s8.bf16 %v277_v51  ;;  %v1731_v62 = vcombine.low %v341_v48, %v342_v49  ;;  %v343_v63 = vunpack.c.l.s8.bf16 %v294_v52  ;;  %v344_v0 = vunpack.c.l.s8.bf16 %v295_v53  ;;  %v278_v1 = vld [vmem:[%s2532_s1 + $0x10] sm:$0x3]  ;;  %v279_v3 = vld [vmem:[%s2532_s1 + $0x12] sm:$0x3]  ;;  %v296_v4 = vld [vmem:[%s2532_s1 + $0x34] sm:$0x3] }
  0x11   : > { %1833 = vmatpush3.bf16.msra.mxu0 %v1721_v42  ;;  %1101 = vmatprep.subr.bf16.mxu1 %v2087_v2  ;;  %v297_v5 = vld [vmem:[%s2532_s1 + $0x36] sm:$0x3]  ;;  %v1739_v6 = vcombine.low %v357_v55, %v358_v56  ;;  %v359_v7 = vunpack.c.l.s8.bf16 %v310_v60  ;;  %v360_v8 = vunpack.c.l.s8.bf16 %v311_v61  ;;  %v327_v10 = vunpack.c.l.s8.bf16 %v278_v1  ;;  %v312_v12 = vld [vmem:[%s2532_s1 + $0x54] sm:$0x3]  ;;  %v298_v19 = vld [vmem:[%s2532_s1 + $0x38] sm:$0x3] }
  0x12   : > { %1834 = vmatprep.subr.bf16.mxu0 %v1730_v47  ;;  %v1723_v9 = vcombine.low %v325_v58, %v326_v59  ;;  %v328_v11 = vunpack.c.l.s8.bf16 %v279_v3  ;;  %v313_v13 = vld [vmem:[%s2532_s1 + $0x56] sm:$0x3]  ;;  %v1732_v14 = vcombine.low %v343_v63, %v344_v0  ;;  %v345_v15 = vunpack.c.l.s8.bf16 %v296_v4  ;;  %v280_v17 = vld [vmem:[%s2532_s1 + $0x14] sm:$0x3]  ;;  %v299_v20 = vld [vmem:[%s2532_s1 + $0x3a] sm:$0x3] }
  0x13   : > { %v346_v16 = vunpack.c.l.s8.bf16 %v297_v5  ;;  %v281_v18 = vld [vmem:[%s2532_s1 + $0x16] sm:$0x3]  ;;  %v1740_v21 = vcombine.low %v359_v7, %v360_v8  ;;  %v361_v22 = vunpack.c.l.s8.bf16 %v312_v12  ;;  %v362_v23 = vunpack.c.l.s8.bf16 %v313_v13  ;;  %s2541_s13 = smov (!%p244_p4, %s1651_s13), 255  ;;  %v314_v27 = vld [vmem:[%s2532_s1 + $0x58] sm:$0x3] }
  0x14   : > { %1102 = vmatpush1.bf16.msra.mxu1 %v1738_v54  ;;  %v1724_v24 = vcombine.low %v327_v10, %v328_v11  ;;  %v329_v25 = vunpack.c.l.s8.bf16 %v280_v17  ;;  %v330_v26 = vunpack.c.l.s8.bf16 %v281_v18  ;;  %v315_v28 = vld [vmem:[%s2532_s1 + $0x5a] sm:$0x3]  ;;  %v282_v29 = vld [vmem:[%s2532_s1 + $0x18] sm:$0x3]  ;;  %v347_v31 = vunpack.c.l.s8.bf16 %v298_v19  ;;  %v300_v34 = vld [vmem:[%s2532_s1 + $0x3c] sm:$0x3] }
  0x15   : > { %1835 = vmatpush3.bf16.msra.mxu0 %v1722_v57  ;;  %1103 = vmatprep.subr.bf16.mxu1 %v2087_v2  ;;  %v1733_v30 = vcombine.low %v345_v15, %v346_v16  ;;  %v348_v32 = vunpack.c.l.s8.bf16 %v299_v20  ;;  %v283_v33 = vld [vmem:[%s2532_s1 + $0x1a] sm:$0x3]  ;;  %s1797_s14 = sshll.u32 %s2541_s13, 4  ;;  %v301_v35 = vld [vmem:[%s2532_s1 + $0x3e] sm:$0x3]  ;;  %v1741_v38 = vcombine.low %v361_v22, %v362_v23  ;;  %v363_v39 = vunpack.c.l.s8.bf16 %v314_v27  ;;  %s1655_s11 = sshll.u32 %s2541_s13, 2 }
  0x16   : > { %1836 = vmatprep.subr.bf16.mxu0 %v1731_v62  ;;  %v316_v36 = vld [vmem:[%s2532_s1 + $0x5c] sm:$0x3]  ;;  %v317_v37 = vld [vmem:[%s2532_s1 + $0x5e] sm:$0x3]  ;;  %s2283_s26 = scalar_lea.vmem %s2531_s0, %s1797_s14  ;;  %v364_v40 = vunpack.c.l.s8.bf16 %v315_v28  ;;  %v1725_v43 = vcombine.low %v329_v25, %v330_v26  ;;  %v331_v44 = vunpack.c.l.s8.bf16 %v282_v29  ;;  %v332_v45 = vunpack.c.l.s8.bf16 %v283_v33  ;;  %v318_v50 = vld [vmem:[%s2532_s1 + $0x60] sm:$0x3]  ;;  %s2396_s19 = scalar_lea.vmem %s2535_s4, %s1655_s11 }
  0x17   : > { %v284_v41 = vld [vmem:[%s2532_s1 + $0x1c] sm:$0x3]  ;;  %v285_v42 = vld [vmem:[%s2532_s1 + $0x1e] sm:$0x3]  ;;  %v1969_v46 = vld [vmem:[%s2283_s26 + $0x4] ss:$16 sps:$4 sm:$0xff]   ;;  %v1734_v47 = vcombine.low %v347_v31, %v348_v32  ;;  %v349_v48 = vunpack.c.l.s8.bf16 %v300_v34  ;;  %v350_v49 = vunpack.c.l.s8.bf16 %v301_v35  ;;  %v365_v53 = vunpack.c.l.s8.bf16 %v316_v36 }
  0x18   : > { %1104 = vmatpush1.bf16.msra.mxu1 %v1739_v6  ;;  %vm883_vm0 = vcmask 64512   ;;  %v1972_v51 = vld [vmem:[%s2283_s26 + $0xc] ss:$16 sps:$4 sm:$0xff]   ;;  %968 = vmatprep.mubr.bf16.mxu0 %v1969_v46  ;;  %v1742_v52 = vcombine.low %v363_v39, %v364_v40  ;;  %v366_v54 = vunpack.c.l.s8.bf16 %v317_v37  ;;  %v1726_v55 = vcombine.low %v331_v44, %v332_v45  ;;  %v1967_v63 = vld [vmem:[%s2283_s26] ss:$16 sps:$4 sm:$0xff]  }
  0x19   : > { %1837 = vmatpush3.bf16.msra.mxu0 %v1723_v9  ;;  %1105 = vmatprep.subr.bf16.mxu1 %v2087_v2  ;;  %v333_v56 = vunpack.c.l.s8.bf16 %v284_v41  ;;  %v334_v57 = vunpack.c.l.s8.bf16 %v285_v42  ;;  %v367_v58 = vunpack.c.l.s8.bf16 %v318_v50  ;;  %v1735_v59 = vcombine.low %v349_v48, %v350_v49  ;;  %v1973_v1 = vld [vmem:[%s2283_s26 + $0x24] ss:$16 sps:$4 sm:$0xff]   ;;  %v1970_v3 = vld [vmem:[%s2283_s26 + $0x8] ss:$16 sps:$4 sm:$0xff]   ;;  %v1976_v4 = vld [vmem:[%s2283_s26 + $0x2c] ss:$16 sps:$4 sm:$0xff]  }
  0x1a   : > { %1838 = vmatprep.subr.bf16.mxu0 %v1732_v14  ;;  %1745 = vmatprep.mubr.msk.bf16.mxu1 %vm883_vm0, %v1972_v51  ;;  %v1743_v60 = vcombine.low %v365_v53, %v366_v54  ;;  %vm932_vm1 = vcmask 1043456   ;;  %v1975_v5 = vld [vmem:[%s2283_s26 + $0x20] ss:$16 sps:$4 sm:$0xff]   ;;  %v1979_v6 = vld [vmem:[%s2283_s26 + $0x44] ss:$16 sps:$4 sm:$0xff]   ;;  %vm1496_vm2 = vcmask 519168  }
  0x1b   : > { %v1727_v61 = vcombine.low %v333_v56, %v334_v57  ;;  %v1744_v62 = vcombine.low %v367_v58, %v367_v58  ;;  %v1978_v7 = vld [vmem:[%s2283_s26 + $0x28] ss:$16 sps:$4 sm:$0xff]   ;;  %v1981_v8 = vld [vmem:[%s2283_s26 + $0x40] ss:$16 sps:$4 sm:$0xff]   ;;  %v1985_v9 = vld [vmem:[%s2283_s26 + $0x64] ss:$16 sps:$4 sm:$0xff]  }
  0x1c   : > { %1106 = vmatpush1.bf16.msra.mxu1 %v1740_v21  ;;  %v1984_v10 = vld [vmem:[%s2283_s26 + $0x48] ss:$16 sps:$4 sm:$0xff]   ;;  %v1988_v11 = vld [vmem:[%s2283_s26 + $0x6c] ss:$16 sps:$4 sm:$0xff]   ;;  %v1987_v12 = vld [vmem:[%s2283_s26 + $0x60] ss:$16 sps:$4 sm:$0xff]  }
  0x1d   : > { %1839 = vmatpush3.bf16.msra.mxu0 %v1724_v24  ;;  %1107 = vmatprep.subr.bf16.mxu1 %v2087_v2  ;;  %v934_v0 = vsel %vm932_vm1, %v1744_v62, 0  ;;  %v1991_v13 = vld [vmem:[%s2283_s26 + $0x84] ss:$16 sps:$4 sm:$0xff]   ;;  %v1990_v14 = vld [vmem:[%s2283_s26 + $0x68] ss:$16 sps:$4 sm:$0xff]  }
  0x1e   : > { %1840 = vmatprep.subr.bf16.mxu0 %v1733_v30  ;;  %v1994_v15 = vld [vmem:[%s2283_s26 + $0x8c] ss:$16 sps:$4 sm:$0xff]   ;;  %v1993_v16 = vld [vmem:[%s2283_s26 + $0x80] ss:$16 sps:$4 sm:$0xff]   ;;  %v1997_v17 = vld [vmem:[%s2283_s26 + $0xa4] ss:$16 sps:$4 sm:$0xff]  }
  0x1f   : > { %v1996_v18 = vld [vmem:[%s2283_s26 + $0x88] ss:$16 sps:$4 sm:$0xff]   ;;  %v2000_v19 = vld [vmem:[%s2283_s26 + $0xac] ss:$16 sps:$4 sm:$0xff]   ;;  %v1999_v20 = vld [vmem:[%s2283_s26 + $0xa0] ss:$16 sps:$4 sm:$0xff]  }
  0x20   : > { %1108 = vmatpush1.bf16.msra.mxu1 %v1741_v38  ;;  %v2003_v21 = vld [vmem:[%s2283_s26 + $0xc4] ss:$16 sps:$4 sm:$0xff]   ;;  %v2002_v22 = vld [vmem:[%s2283_s26 + $0xa8] ss:$16 sps:$4 sm:$0xff]   ;;  %v2006_v23 = vld [vmem:[%s2283_s26 + $0xcc] ss:$16 sps:$4 sm:$0xff]  }
  0x21   : > { %1841 = vmatpush3.bf16.msra.mxu0 %v1725_v43  ;;  %1109 = vmatprep.subr.bf16.mxu1 %v2087_v2  ;;  %v2005_v24 = vld [vmem:[%s2283_s26 + $0xc0] ss:$16 sps:$4 sm:$0xff]   ;;  %v2009_v25 = vld [vmem:[%s2283_s26 + $0xe4] ss:$16 sps:$4 sm:$0xff]   ;;  %v2008_v26 = vld [vmem:[%s2283_s26 + $0xc8] ss:$16 sps:$4 sm:$0xff]  }
  0x22   : > { %1842 = vmatprep.subr.bf16.mxu0 %v1734_v47  ;;  %v2012_v27 = vld [vmem:[%s2283_s26 + $0xec] ss:$16 sps:$4 sm:$0xff]   ;;  %v2011_v28 = vld [vmem:[%s2283_s26 + $0xe0] ss:$16 sps:$4 sm:$0xff]   ;;  %v2015_v29 = vld [vmem:[%s2283_s26 + $0x104] ss:$16 sps:$4 sm:$0xff]  }
  0x23   : > { %v2014_v30 = vld [vmem:[%s2283_s26 + $0xe8] ss:$16 sps:$4 sm:$0xff]   ;;  %v2018_v31 = vld [vmem:[%s2283_s26 + $0x10c] ss:$16 sps:$4 sm:$0xff]   ;;  %v2017_v32 = vld [vmem:[%s2283_s26 + $0x100] ss:$16 sps:$4 sm:$0xff]  }
  0x24   : > { %1110 = vmatpush1.bf16.msra.mxu1 %v1742_v52  ;;  %v2021_v33 = vld [vmem:[%s2283_s26 + $0x124] ss:$16 sps:$4 sm:$0xff]   ;;  %v2020_v34 = vld [vmem:[%s2283_s26 + $0x108] ss:$16 sps:$4 sm:$0xff]   ;;  %v2024_v35 = vld [vmem:[%s2283_s26 + $0x12c] ss:$16 sps:$4 sm:$0xff]  }
  0x25   : > { %1843 = vmatpush3.bf16.msra.mxu0 %v1726_v55  ;;  %1111 = vmatprep.subr.bf16.mxu1 %v2087_v2  ;;  %v2023_v36 = vld [vmem:[%s2283_s26 + $0x120] ss:$16 sps:$4 sm:$0xff]   ;;  %v2027_v37 = vld [vmem:[%s2283_s26 + $0x144] ss:$16 sps:$4 sm:$0xff]   ;;  %v2026_v38 = vld [vmem:[%s2283_s26 + $0x128] ss:$16 sps:$4 sm:$0xff]  }
  0x26   : > { %1844 = vmatprep.subr.bf16.mxu0 %v1735_v59  ;;  %v2030_v39 = vld [vmem:[%s2283_s26 + $0x14c] ss:$16 sps:$4 sm:$0xff]   ;;  %v2029_v40 = vld [vmem:[%s2283_s26 + $0x140] ss:$16 sps:$4 sm:$0xff]   ;;  %v2033_v41 = vld [vmem:[%s2283_s26 + $0x164] ss:$16 sps:$4 sm:$0xff]  }
  0x27   : > { %v2032_v42 = vld [vmem:[%s2283_s26 + $0x148] ss:$16 sps:$4 sm:$0xff]   ;;  %v2036_v43 = vld [vmem:[%s2283_s26 + $0x16c] ss:$16 sps:$4 sm:$0xff]   ;;  %v2035_v44 = vld [vmem:[%s2283_s26 + $0x160] ss:$16 sps:$4 sm:$0xff]  }
  0x28   : > { %1112 = vmatpush1.bf16.msra.mxu1 %v1743_v60  ;;  %v2039_v45 = vld [vmem:[%s2283_s26 + $0x184] ss:$16 sps:$4 sm:$0xff]   ;;  %v2038_v46 = vld [vmem:[%s2283_s26 + $0x168] ss:$16 sps:$4 sm:$0xff]   ;;  %v2042_v47 = vld [vmem:[%s2283_s26 + $0x18c] ss:$16 sps:$4 sm:$0xff]  }
  0x29   : > { %1845 = vmatpush3.bf16.msra.mxu0 %v1727_v61  ;;  %1113 = vmatprep.subr.bf16.mxu1 %v2087_v2  ;;  %v1982_v2 = vld [vmem:[%s2283_s26 + $0x4c] ss:$16 sps:$4 sm:$0xff]   ;;  %v2041_v48 = vld [vmem:[%s2283_s26 + $0x180] ss:$16 sps:$4 sm:$0xff]   ;;  %v2045_v49 = vld [vmem:[%s2283_s26 + $0x1a4] ss:$16 sps:$4 sm:$0xff]  }
  0x2a   : > { %v2044_v50 = vld [vmem:[%s2283_s26 + $0x188] ss:$16 sps:$4 sm:$0xff]   ;;  %v2048_v51 = vld [vmem:[%s2283_s26 + $0x1ac] ss:$16 sps:$4 sm:$0xff]   ;;  %v2047_v52 = vld [vmem:[%s2283_s26 + $0x1a0] ss:$16 sps:$4 sm:$0xff]  }
  0x2b   : > { %v2051_v53 = vld [vmem:[%s2283_s26 + $0x1c4] ss:$16 sps:$4 sm:$0xff]   ;;  %v2050_v54 = vld [vmem:[%s2283_s26 + $0x1a8] ss:$16 sps:$4 sm:$0xff]   ;;  %v2054_v55 = vld [vmem:[%s2283_s26 + $0x1cc] ss:$16 sps:$4 sm:$0xff]  }
  0x2c   : > { %969 = vmatmul.mubr.bf16.vlgmr.msra.gmra.mrb[0].mxu0 %v1967_v63  ;;  %1114 = vmatpush1.bf16.msra.mxu1 %v934_v0  ;;  %v2053_v56 = vld [vmem:[%s2283_s26 + $0x1c0] ss:$16 sps:$4 sm:$0xff]   ;;  %v2057_v57 = vld [vmem:[%s2283_s26 + $0x1e4] ss:$16 sps:$4 sm:$0xff]   ;;  %v2056_v58 = vld [vmem:[%s2283_s26 + $0x1c8] ss:$16 sps:$4 sm:$0xff]  }
  0x2d   : > { %976 = vmatprep.mubr.bf16.mxu0 %v1973_v1  ;;  %v2060_v59 = vld [vmem:[%s2283_s26 + $0x1ec] ss:$16 sps:$4 sm:$0xff]   ;;  %v2059_v60 = vld [vmem:[%s2283_s26 + $0x1e0] ss:$16 sps:$4 sm:$0xff]   ;;  %v2062_v61 = vld [vmem:[%s2283_s26 + $0x1e8] ss:$16 sps:$4 sm:$0xff]  }
  0x2f   : > { %1130 = vmatmul.mubr.bf16.vlgmr.msra.gmra.mrb[0].mxu1 %v1970_v3 }
  0x30   : > { %1746 = vmatprep.mubr.msk.bf16.mxu1 %vm883_vm0, %v1976_v4 }
  0x34   : > { %977 = vmatmul.mubr.bf16.gmra.mrb[4].mxu0 %v1975_v5  ;;  %v2381_v5 = vld [vmem:[%s2533_s2] ss:$0 sm:$0xff] }
  0x35   : > { %984 = vmatprep.mubr.bf16.mxu0 %v1979_v6 }
  0x37   : > { %1138 = vmatmul.mubr.bf16.gmra.mrb[4].mxu1 %v1978_v7 }
  0x38   : > { %1747 = vmatprep.mubr.msk.bf16.mxu1 %vm883_vm0, %v1982_v2 }
  0x3c   : > { %985 = vmatmul.mubr.bf16.gmra.mrb[8].mxu0 %v1981_v8  ;;  %v2386_v8 = vld [vmem:[%s2534_s3] ss:$0 sm:$0xff] }
  0x3d   : > { %992 = vmatprep.mubr.bf16.mxu0 %v1985_v9 }
  0x3f   : > { %1146 = vmatmul.mubr.bf16.gmra.mrb[8].mxu1 %v1984_v10 }
  0x40   : > { %1748 = vmatprep.mubr.msk.bf16.mxu1 %vm883_vm0, %v1988_v11 }
  0x44   : > { %993 = vmatmul.mubr.bf16.gmra.mrb[12].mxu0 %v1987_v12 }
  0x45   : > { %1000 = vmatprep.mubr.bf16.mxu0 %v1991_v13 }
  0x47   : > { %1154 = vmatmul.mubr.bf16.gmra.mrb[12].mxu1 %v1990_v14 }
  0x48   : > { %1749 = vmatprep.mubr.msk.bf16.mxu1 %vm883_vm0, %v1994_v15 }
  0x4c   : > { %1001 = vmatmul.mubr.bf16.gmra.mrb[16].mxu0 %v1993_v16 }
  0x4d   : > { %1008 = vmatprep.mubr.bf16.mxu0 %v1997_v17 }
  0x4f   : > { %1162 = vmatmul.mubr.bf16.gmra.mrb[16].mxu1 %v1996_v18 }
  0x50   : > { %1750 = vmatprep.mubr.msk.bf16.mxu1 %vm883_vm0, %v2000_v19 }
  0x54   : > { %1009 = vmatmul.mubr.bf16.gmra.mrb[20].mxu0 %v1999_v20 }
  0x55   : > { %1016 = vmatprep.mubr.bf16.mxu0 %v2003_v21 }
  0x57   : > { %1170 = vmatmul.mubr.bf16.gmra.mrb[20].mxu1 %v2002_v22 }
  0x58   : > { %1751 = vmatprep.mubr.msk.bf16.mxu1 %vm883_vm0, %v2006_v23 }
  0x5c   : > { %1017 = vmatmul.mubr.bf16.gmra.mrb[24].mxu0 %v2005_v24 }
  0x5d   : > { %1024 = vmatprep.mubr.bf16.mxu0 %v2009_v25 }
  0x5f   : > { %1178 = vmatmul.mubr.bf16.gmra.mrb[24].mxu1 %v2008_v26 }
  0x60   : > { %1752 = vmatprep.mubr.msk.bf16.mxu1 %vm883_vm0, %v2012_v27 }
  0x64   : > { %1025 = vmatmul.mubr.bf16.gmra.mrb[28].mxu0 %v2011_v28 }
  0x65   : > { %1032 = vmatprep.mubr.bf16.mxu0 %v2015_v29 }
  0x67   : > { %1186 = vmatmul.mubr.bf16.gmra.mrb[28].mxu1 %v2014_v30 }
  0x68   : > { %1753 = vmatprep.mubr.msk.bf16.mxu1 %vm883_vm0, %v2018_v31 }
  0x6c   : > { %1033 = vmatmul.mubr.bf16.gmra.mrb[32].mxu0 %v2017_v32 }
  0x6d   : > { %1040 = vmatprep.mubr.bf16.mxu0 %v2021_v33 }
  0x6f   : > { %1194 = vmatmul.mubr.bf16.gmra.mrb[32].mxu1 %v2020_v34 }
  0x70   : > { %1754 = vmatprep.mubr.msk.bf16.mxu1 %vm883_vm0, %v2024_v35 }
  0x74   : > { %1041 = vmatmul.mubr.bf16.gmra.mrb[36].mxu0 %v2023_v36 }
  0x75   : > { %1048 = vmatprep.mubr.bf16.mxu0 %v2027_v37 }
  0x77   : > { %1202 = vmatmul.mubr.bf16.gmra.mrb[36].mxu1 %v2026_v38 }
  0x78   : > { %1755 = vmatprep.mubr.msk.bf16.mxu1 %vm883_vm0, %v2030_v39 }
  0x7c   : > { %1049 = vmatmul.mubr.bf16.gmra.mrb[40].mxu0 %v2029_v40 }
  0x7d   : > { %1056 = vmatprep.mubr.bf16.mxu0 %v2033_v41 }
  0x7f   : > { %1210 = vmatmul.mubr.bf16.gmra.mrb[40].mxu1 %v2032_v42 }
  0x80   : > { %1756 = vmatprep.mubr.msk.bf16.mxu1 %vm883_vm0, %v2036_v43 }
  0x84   : > { %1057 = vmatmul.mubr.bf16.gmra.mrb[44].mxu0 %v2035_v44 }
  0x85   : > { %1064 = vmatprep.mubr.bf16.mxu0 %v2039_v45 }
  0x87   : > { %1218 = vmatmul.mubr.bf16.gmra.mrb[44].mxu1 %v2038_v46 }
  0x88   : > { %1757 = vmatprep.mubr.msk.bf16.mxu1 %vm883_vm0, %v2042_v47 }
  0x8c   : > { %1065 = vmatmul.mubr.bf16.gmra.mrb[48].mxu0 %v2041_v48 }
  0x8d   : > { %1072 = vmatprep.mubr.bf16.mxu0 %v2045_v49 }
  0x8f   : > { %1226 = vmatmul.mubr.bf16.gmra.mrb[48].mxu1 %v2044_v50 }
  0x90   : > { %1758 = vmatprep.mubr.msk.bf16.mxu1 %vm883_vm0, %v2048_v51 }
  0x94   : > { %1073 = vmatmul.mubr.bf16.gmra.mrb[52].mxu0 %v2047_v52 }
  0x95   : > { %1080 = vmatprep.mubr.bf16.mxu0 %v2051_v53 }
  0x97   : > { %1234 = vmatmul.mubr.bf16.gmra.mrb[52].mxu1 %v2050_v54 }
  0x98   : > { %1759 = vmatprep.mubr.msk.bf16.mxu1 %vm883_vm0, %v2054_v55 }
  0x9c   : > { %1081 = vmatmul.mubr.bf16.gmra.mrb[56].mxu0 %v2053_v56 }
  0x9d   : > { %1088 = vmatprep.mubr.bf16.mxu0 %v2057_v57 }
  0x9f   : > { %1242 = vmatmul.mubr.bf16.gmra.mrb[56].mxu1 %v2056_v58 }
  0xa0   : > { %1760 = vmatprep.mubr.msk.bf16.mxu1 %vm883_vm0, %v2060_v59 }
  0xa4   : > { %1089 = vmatmul.mubr.bf16.gmra.mrb[60].mxu0 %v2059_v60 }
  0xa7   : > { %1250 = vmatmul.mubr.bf16.gmra.mrb[60].mxu1 %v2062_v61 }
  0xff   : > { %v1846_v62 = vpop.f32.mrb[0].mxu0 }
 0x100   : > { %v1847_v63 = vpop.f32.mrb[1].mxu0 }
 0x101   : > { %v1848_v0 = vadd.f32 %v1847_v63, %v1846_v62  ;;  %v1849_v1 = vpop.f32.mrb[2].mxu0 }
 0x102   : > { %v1850_v3 = vpop.f32.mrb[3].mxu0  ;;  %v1131_v4 = vpop.f32.mrb[0].mxu1 }
 0x103   : > { %v1851_v6 = vadd.f32 %v1850_v3, %v1849_v1  ;;  %v1132_v7 = vadd.f32 %v1848_v0, %v1131_v4  ;;  %v1133_v2 = vpop.f32.mrb[1].mxu1 }
 0x104   : > { %v1134_v9 = vpop.f32.mrb[2].mxu1 }
 0x105   : > { %v1265_v10 = vmul.f32 %v2381_v5, %v1132_v7  ;;  %v1135_v11 = vadd.f32 %v1851_v6, %v1134_v9  ;;  %v1136_v12 = vpop.f32.mrb[3].mxu1 }
 0x107   : > { %v1304_v13 = vadd.f32 %v2386_v8, %v1265_v10  ;;  %v1266_v14 = vmul.f32 %v2381_v5, %v1135_v11  ;;  %v1852_v15 = vpop.f32.mrb[4].mxu0 }
 0x108   : > { %v1853_v16 = vpop.f32.mrb[5].mxu0 }
 0x109   : > { %v1336_v17 = vmax.f32 %v1304_v13, 0.0  ;;  %v1305_v18 = vadd.f32 %v2386_v8, %v1266_v14  ;;  %v1854_v19 = vadd.f32 %v1853_v16, %v1852_v15  ;;  %v1855_v20 = vpop.f32.mrb[6].mxu0 }
 0x10a   : > { %v1856_v21 = vpop.f32.mrb[7].mxu0  ;;  %v1139_v22 = vpop.f32.mrb[4].mxu1 }
 0x10b   : > { %v1798_v23 = vpack.c.bf16 %v1336_v17, %v1336_v17  ;;  %v1337_v24 = vmax.f32 %v1305_v18, 0.0  ;;  %v1857_v25 = vadd.f32 %v1856_v21, %v1855_v20  ;;  %v1140_v26 = vadd.f32 %v1854_v19, %v1139_v22  ;;  %v1141_v27 = vpop.f32.mrb[5].mxu1 }
 0x10c   : > { %v1142_v28 = vpop.f32.mrb[6].mxu1 }
 0x10d   : > { %1497 = vst.msk [vmem:[%s2396_s19] sm:$0xf] %vm1496_vm2, %v1798_v23  ;;  %v1799_v29 = vpack.c.bf16 %v1337_v24, %v1337_v24  ;;  %v1267_v30 = vmul.f32 %v2381_v5, %v1140_v26  ;;  %v1143_v31 = vadd.f32 %v1857_v25, %v1142_v28  ;;  %v1144_v32 = vpop.f32.mrb[7].mxu1 }
 0x10f   : > { %1498 = vst.msk [vmem:[%s2396_s19 + $0x4] sm:$0xf] %vm1496_vm2, %v1799_v29  ;;  %v1306_v33 = vadd.f32 %v2386_v8, %v1267_v30  ;;  %v1268_v34 = vmul.f32 %v2381_v5, %v1143_v31  ;;  %v1858_v35 = vpop.f32.mrb[8].mxu0 }
 0x110   : > { %v1859_v36 = vpop.f32.mrb[9].mxu0 }
 0x111   : > { %v1338_v37 = vmax.f32 %v1306_v33, 0.0  ;;  %v1307_v38 = vadd.f32 %v2386_v8, %v1268_v34  ;;  %v1860_v39 = vadd.f32 %v1859_v36, %v1858_v35  ;;  %v1861_v40 = vpop.f32.mrb[10].mxu0 }
 0x112   : > { %v1862_v41 = vpop.f32.mrb[11].mxu0  ;;  %v1147_v42 = vpop.f32.mrb[8].mxu1 }
 0x113   : > { %v1800_v43 = vpack.c.bf16 %v1338_v37, %v1338_v37  ;;  %v1339_v44 = vmax.f32 %v1307_v38, 0.0  ;;  %v1863_v45 = vadd.f32 %v1862_v41, %v1861_v40  ;;  %v1148_v46 = vadd.f32 %v1860_v39, %v1147_v42  ;;  %v1149_v47 = vpop.f32.mrb[9].mxu1 }
 0x114   : > { %v1150_v48 = vpop.f32.mrb[10].mxu1 }
 0x115   : > { %1499 = vst.msk [vmem:[%s2396_s19 + $0x8] sm:$0xf] %vm1496_vm2, %v1800_v43  ;;  %v1801_v49 = vpack.c.bf16 %v1339_v44, %v1339_v44  ;;  %v1269_v50 = vmul.f32 %v2381_v5, %v1148_v46  ;;  %v1151_v51 = vadd.f32 %v1863_v45, %v1150_v48  ;;  %v1152_v52 = vpop.f32.mrb[11].mxu1 }
 0x117   : > { %1500 = vst.msk [vmem:[%s2396_s19 + $0xc] sm:$0xf] %vm1496_vm2, %v1801_v49  ;;  %v1308_v53 = vadd.f32 %v2386_v8, %v1269_v50  ;;  %v1270_v54 = vmul.f32 %v2381_v5, %v1151_v51  ;;  %v1864_v55 = vpop.f32.mrb[12].mxu0 }
 0x118   : > { %v1865_v56 = vpop.f32.mrb[13].mxu0 }
 0x119   : > { %v1340_v57 = vmax.f32 %v1308_v53, 0.0  ;;  %v1309_v58 = vadd.f32 %v2386_v8, %v1270_v54  ;;  %v1866_v59 = vadd.f32 %v1865_v56, %v1864_v55  ;;  %v1867_v60 = vpop.f32.mrb[14].mxu0 }
 0x11a   : > { %v1868_v61 = vpop.f32.mrb[15].mxu0  ;;  %v1155_v62 = vpop.f32.mrb[12].mxu1 }
 0x11b   : > { %v1802_v63 = vpack.c.bf16 %v1340_v57, %v1340_v57  ;;  %v1341_v0 = vmax.f32 %v1309_v58, 0.0  ;;  %v1869_v1 = vadd.f32 %v1868_v61, %v1867_v60  ;;  %v1156_v3 = vadd.f32 %v1866_v59, %v1155_v62  ;;  %v1157_v4 = vpop.f32.mrb[13].mxu1 }
 0x11c   : > { %v1158_v6 = vpop.f32.mrb[14].mxu1 }
 0x11d   : > { %1501 = vst.msk [vmem:[%s2396_s19 + $0x10] sm:$0xf] %vm1496_vm2, %v1802_v63  ;;  %v1803_v7 = vpack.c.bf16 %v1341_v0, %v1341_v0  ;;  %v1271_v2 = vmul.f32 %v2381_v5, %v1156_v3  ;;  %v1159_v9 = vadd.f32 %v1869_v1, %v1158_v6  ;;  %v1160_v10 = vpop.f32.mrb[15].mxu1 }
 0x11f   : > { %1502 = vst.msk [vmem:[%s2396_s19 + $0x14] sm:$0xf] %vm1496_vm2, %v1803_v7  ;;  %v1310_v11 = vadd.f32 %v2386_v8, %v1271_v2  ;;  %v1272_v12 = vmul.f32 %v2381_v5, %v1159_v9  ;;  %v1870_v13 = vpop.f32.mrb[16].mxu0 }
 0x120   : > { %v1871_v14 = vpop.f32.mrb[17].mxu0 }
 0x121   : > { %v1342_v15 = vmax.f32 %v1310_v11, 0.0  ;;  %v1311_v16 = vadd.f32 %v2386_v8, %v1272_v12  ;;  %v1872_v17 = vadd.f32 %v1871_v14, %v1870_v13  ;;  %v1873_v18 = vpop.f32.mrb[18].mxu0 }
 0x122   : > { %v1874_v19 = vpop.f32.mrb[19].mxu0  ;;  %v1163_v20 = vpop.f32.mrb[16].mxu1 }
 0x123   : > { %v1804_v21 = vpack.c.bf16 %v1342_v15, %v1342_v15  ;;  %v1343_v22 = vmax.f32 %v1311_v16, 0.0  ;;  %v1875_v23 = vadd.f32 %v1874_v19, %v1873_v18  ;;  %v1164_v24 = vadd.f32 %v1872_v17, %v1163_v20  ;;  %v1165_v25 = vpop.f32.mrb[17].mxu1 }
 0x124   : > { %v1166_v26 = vpop.f32.mrb[18].mxu1 }
 0x125   : > { %1503 = vst.msk [vmem:[%s2396_s19 + $0x18] sm:$0xf] %vm1496_vm2, %v1804_v21  ;;  %v1805_v27 = vpack.c.bf16 %v1343_v22, %v1343_v22  ;;  %v1273_v28 = vmul.f32 %v2381_v5, %v1164_v24  ;;  %v1167_v29 = vadd.f32 %v1875_v23, %v1166_v26  ;;  %v1168_v30 = vpop.f32.mrb[19].mxu1 }
 0x127   : > { %1504 = vst.msk [vmem:[%s2396_s19 + $0x1c] sm:$0xf] %vm1496_vm2, %v1805_v27  ;;  %v1312_v31 = vadd.f32 %v2386_v8, %v1273_v28  ;;  %v1274_v32 = vmul.f32 %v2381_v5, %v1167_v29  ;;  %v1876_v33 = vpop.f32.mrb[20].mxu0 }
 0x128   : > { %v1877_v34 = vpop.f32.mrb[21].mxu0 }
 0x129   : > { %v1344_v35 = vmax.f32 %v1312_v31, 0.0  ;;  %v1313_v36 = vadd.f32 %v2386_v8, %v1274_v32  ;;  %v1878_v37 = vadd.f32 %v1877_v34, %v1876_v33  ;;  %v1879_v38 = vpop.f32.mrb[22].mxu0 }
 0x12a   : > { %v1880_v39 = vpop.f32.mrb[23].mxu0  ;;  %v1171_v40 = vpop.f32.mrb[20].mxu1 }
 0x12b   : > { %v1806_v41 = vpack.c.bf16 %v1344_v35, %v1344_v35  ;;  %v1345_v42 = vmax.f32 %v1313_v36, 0.0  ;;  %v1881_v43 = vadd.f32 %v1880_v39, %v1879_v38  ;;  %v1172_v44 = vadd.f32 %v1878_v37, %v1171_v40  ;;  %v1173_v45 = vpop.f32.mrb[21].mxu1 }
 0x12c   : > { %v1174_v46 = vpop.f32.mrb[22].mxu1 }
 0x12d   : > { %1505 = vst.msk [vmem:[%s2396_s19 + $0x20] sm:$0xf] %vm1496_vm2, %v1806_v41  ;;  %v1807_v47 = vpack.c.bf16 %v1345_v42, %v1345_v42  ;;  %v1275_v48 = vmul.f32 %v2381_v5, %v1172_v44  ;;  %v1175_v49 = vadd.f32 %v1881_v43, %v1174_v46  ;;  %v1176_v50 = vpop.f32.mrb[23].mxu1 }
 0x12f   : > { %1506 = vst.msk [vmem:[%s2396_s19 + $0x24] sm:$0xf] %vm1496_vm2, %v1807_v47  ;;  %v1314_v51 = vadd.f32 %v2386_v8, %v1275_v48  ;;  %v1276_v52 = vmul.f32 %v2381_v5, %v1175_v49  ;;  %v1882_v53 = vpop.f32.mrb[24].mxu0 }
 0x130   : > { %v1883_v54 = vpop.f32.mrb[25].mxu0 }
 0x131   : > { %v1346_v55 = vmax.f32 %v1314_v51, 0.0  ;;  %v1315_v56 = vadd.f32 %v2386_v8, %v1276_v52  ;;  %v1884_v57 = vadd.f32 %v1883_v54, %v1882_v53  ;;  %v1885_v58 = vpop.f32.mrb[26].mxu0 }
 0x132   : > { %v1886_v59 = vpop.f32.mrb[27].mxu0  ;;  %v1179_v60 = vpop.f32.mrb[24].mxu1 }
 0x133   : > { %v1808_v61 = vpack.c.bf16 %v1346_v55, %v1346_v55  ;;  %v1347_v62 = vmax.f32 %v1315_v56, 0.0  ;;  %v1887_v63 = vadd.f32 %v1886_v59, %v1885_v58  ;;  %v1180_v0 = vadd.f32 %v1884_v57, %v1179_v60  ;;  %v1181_v1 = vpop.f32.mrb[25].mxu1 }
 0x134   : > { %v1182_v3 = vpop.f32.mrb[26].mxu1 }
 0x135   : > { %1507 = vst.msk [vmem:[%s2396_s19 + $0x28] sm:$0xf] %vm1496_vm2, %v1808_v61  ;;  %v1809_v4 = vpack.c.bf16 %v1347_v62, %v1347_v62  ;;  %v1277_v6 = vmul.f32 %v2381_v5, %v1180_v0  ;;  %v1183_v7 = vadd.f32 %v1887_v63, %v1182_v3  ;;  %v1184_v2 = vpop.f32.mrb[27].mxu1 }
 0x137   : > { %1508 = vst.msk [vmem:[%s2396_s19 + $0x2c] sm:$0xf] %vm1496_vm2, %v1809_v4  ;;  %v1316_v9 = vadd.f32 %v2386_v8, %v1277_v6  ;;  %v1278_v10 = vmul.f32 %v2381_v5, %v1183_v7  ;;  %v1888_v11 = vpop.f32.mrb[28].mxu0 }
 0x138   : > { %v1889_v12 = vpop.f32.mrb[29].mxu0 }
 0x139   : > { %v1348_v13 = vmax.f32 %v1316_v9, 0.0  ;;  %v1317_v14 = vadd.f32 %v2386_v8, %v1278_v10  ;;  %v1890_v15 = vadd.f32 %v1889_v12, %v1888_v11  ;;  %v1891_v16 = vpop.f32.mrb[30].mxu0 }
 0x13a   : > { %v1892_v17 = vpop.f32.mrb[31].mxu0  ;;  %v1187_v18 = vpop.f32.mrb[28].mxu1 }
 0x13b   : > { %v1810_v19 = vpack.c.bf16 %v1348_v13, %v1348_v13  ;;  %v1349_v20 = vmax.f32 %v1317_v14, 0.0  ;;  %v1893_v21 = vadd.f32 %v1892_v17, %v1891_v16  ;;  %v1188_v22 = vadd.f32 %v1890_v15, %v1187_v18  ;;  %v1189_v23 = vpop.f32.mrb[29].mxu1 }
 0x13c   : > { %v1190_v24 = vpop.f32.mrb[30].mxu1 }
 0x13d   : > { %1509 = vst.msk [vmem:[%s2396_s19 + $0x30] sm:$0xf] %vm1496_vm2, %v1810_v19  ;;  %v1811_v25 = vpack.c.bf16 %v1349_v20, %v1349_v20  ;;  %v1279_v26 = vmul.f32 %v2381_v5, %v1188_v22  ;;  %v1191_v27 = vadd.f32 %v1893_v21, %v1190_v24  ;;  %v1192_v28 = vpop.f32.mrb[31].mxu1 }
 0x13f   : > { %1510 = vst.msk [vmem:[%s2396_s19 + $0x34] sm:$0xf] %vm1496_vm2, %v1811_v25  ;;  %v1318_v29 = vadd.f32 %v2386_v8, %v1279_v26  ;;  %v1280_v30 = vmul.f32 %v2381_v5, %v1191_v27  ;;  %v1894_v31 = vpop.f32.mrb[32].mxu0 }
 0x140   : > { %v1895_v32 = vpop.f32.mrb[33].mxu0 }
 0x141   : > { %v1350_v33 = vmax.f32 %v1318_v29, 0.0  ;;  %v1319_v34 = vadd.f32 %v2386_v8, %v1280_v30  ;;  %v1896_v35 = vadd.f32 %v1895_v32, %v1894_v31  ;;  %v1897_v36 = vpop.f32.mrb[34].mxu0 }
 0x142   : > { %v1898_v37 = vpop.f32.mrb[35].mxu0  ;;  %v1195_v38 = vpop.f32.mrb[32].mxu1 }
 0x143   : > { %v1812_v39 = vpack.c.bf16 %v1350_v33, %v1350_v33  ;;  %v1351_v40 = vmax.f32 %v1319_v34, 0.0  ;;  %v1899_v41 = vadd.f32 %v1898_v37, %v1897_v36  ;;  %v1196_v42 = vadd.f32 %v1896_v35, %v1195_v38  ;;  %v1197_v43 = vpop.f32.mrb[33].mxu1 }
 0x144   : > { %v1198_v44 = vpop.f32.mrb[34].mxu1 }
 0x145   : > { %1511 = vst.msk [vmem:[%s2396_s19 + $0x38] sm:$0xf] %vm1496_vm2, %v1812_v39  ;;  %v1813_v45 = vpack.c.bf16 %v1351_v40, %v1351_v40  ;;  %v1281_v46 = vmul.f32 %v2381_v5, %v1196_v42  ;;  %v1199_v47 = vadd.f32 %v1899_v41, %v1198_v44  ;;  %v1200_v48 = vpop.f32.mrb[35].mxu1 }
 0x147   : > { %1512 = vst.msk [vmem:[%s2396_s19 + $0x3c] sm:$0xf] %vm1496_vm2, %v1813_v45  ;;  %v1320_v49 = vadd.f32 %v2386_v8, %v1281_v46  ;;  %v1282_v50 = vmul.f32 %v2381_v5, %v1199_v47  ;;  %v1900_v51 = vpop.f32.mrb[36].mxu0 }
 0x148   : > { %v1901_v52 = vpop.f32.mrb[37].mxu0 }
 0x149   : > { %v1352_v53 = vmax.f32 %v1320_v49, 0.0  ;;  %v1321_v54 = vadd.f32 %v2386_v8, %v1282_v50  ;;  %v1902_v55 = vadd.f32 %v1901_v52, %v1900_v51  ;;  %v1903_v56 = vpop.f32.mrb[38].mxu0 }
 0x14a   : > { %v1904_v57 = vpop.f32.mrb[39].mxu0  ;;  %v1203_v58 = vpop.f32.mrb[36].mxu1 }
 0x14b   : > { %v1814_v59 = vpack.c.bf16 %v1352_v53, %v1352_v53  ;;  %v1353_v60 = vmax.f32 %v1321_v54, 0.0  ;;  %v1905_v61 = vadd.f32 %v1904_v57, %v1903_v56  ;;  %v1204_v62 = vadd.f32 %v1902_v55, %v1203_v58  ;;  %v1205_v63 = vpop.f32.mrb[37].mxu1 }
 0x14c   : > { %v1206_v0 = vpop.f32.mrb[38].mxu1 }
 0x14d   : > { %1513 = vst.msk [vmem:[%s2396_s19 + $0x40] sm:$0xf] %vm1496_vm2, %v1814_v59  ;;  %v1815_v1 = vpack.c.bf16 %v1353_v60, %v1353_v60  ;;  %v1283_v3 = vmul.f32 %v2381_v5, %v1204_v62  ;;  %v1207_v4 = vadd.f32 %v1905_v61, %v1206_v0  ;;  %v1208_v6 = vpop.f32.mrb[39].mxu1 }
 0x14f   : > { %1514 = vst.msk [vmem:[%s2396_s19 + $0x44] sm:$0xf] %vm1496_vm2, %v1815_v1  ;;  %v1322_v7 = vadd.f32 %v2386_v8, %v1283_v3  ;;  %v1284_v2 = vmul.f32 %v2381_v5, %v1207_v4  ;;  %v1906_v9 = vpop.f32.mrb[40].mxu0 }
 0x150   : > { %v1907_v10 = vpop.f32.mrb[41].mxu0 }
 0x151   : > { %v1354_v11 = vmax.f32 %v1322_v7, 0.0  ;;  %v1323_v12 = vadd.f32 %v2386_v8, %v1284_v2  ;;  %v1908_v13 = vadd.f32 %v1907_v10, %v1906_v9  ;;  %v1909_v14 = vpop.f32.mrb[42].mxu0 }
 0x152   : > { %v1910_v15 = vpop.f32.mrb[43].mxu0  ;;  %v1211_v16 = vpop.f32.mrb[40].mxu1 }
 0x153   : > { %v1816_v17 = vpack.c.bf16 %v1354_v11, %v1354_v11  ;;  %v1355_v18 = vmax.f32 %v1323_v12, 0.0  ;;  %v1911_v19 = vadd.f32 %v1910_v15, %v1909_v14  ;;  %v1212_v20 = vadd.f32 %v1908_v13, %v1211_v16  ;;  %v1213_v21 = vpop.f32.mrb[41].mxu1 }
 0x154   : > { %v1214_v22 = vpop.f32.mrb[42].mxu1 }
 0x155   : > { %1515 = vst.msk [vmem:[%s2396_s19 + $0x48] sm:$0xf] %vm1496_vm2, %v1816_v17  ;;  %v1817_v23 = vpack.c.bf16 %v1355_v18, %v1355_v18  ;;  %v1285_v24 = vmul.f32 %v2381_v5, %v1212_v20  ;;  %v1215_v25 = vadd.f32 %v1911_v19, %v1214_v22  ;;  %v1216_v26 = vpop.f32.mrb[43].mxu1 }
 0x157   : > { %1516 = vst.msk [vmem:[%s2396_s19 + $0x4c] sm:$0xf] %vm1496_vm2, %v1817_v23  ;;  %v1324_v27 = vadd.f32 %v2386_v8, %v1285_v24  ;;  %v1286_v28 = vmul.f32 %v2381_v5, %v1215_v25  ;;  %v1912_v29 = vpop.f32.mrb[44].mxu0 }
 0x158   : > { %v1913_v30 = vpop.f32.mrb[45].mxu0 }
 0x159   : > { %v1356_v31 = vmax.f32 %v1324_v27, 0.0  ;;  %v1325_v32 = vadd.f32 %v2386_v8, %v1286_v28  ;;  %v1914_v33 = vadd.f32 %v1913_v30, %v1912_v29  ;;  %v1915_v34 = vpop.f32.mrb[46].mxu0 }
 0x15a   : > { %v1916_v35 = vpop.f32.mrb[47].mxu0  ;;  %v1219_v36 = vpop.f32.mrb[44].mxu1 }
 0x15b   : > { %v1818_v37 = vpack.c.bf16 %v1356_v31, %v1356_v31  ;;  %v1357_v38 = vmax.f32 %v1325_v32, 0.0  ;;  %v1917_v39 = vadd.f32 %v1916_v35, %v1915_v34  ;;  %v1220_v40 = vadd.f32 %v1914_v33, %v1219_v36  ;;  %v1221_v41 = vpop.f32.mrb[45].mxu1 }
 0x15c   : > { %v1222_v42 = vpop.f32.mrb[46].mxu1 }
 0x15d   : > { %1517 = vst.msk [vmem:[%s2396_s19 + $0x50] sm:$0xf] %vm1496_vm2, %v1818_v37  ;;  %v1819_v43 = vpack.c.bf16 %v1357_v38, %v1357_v38  ;;  %v1287_v44 = vmul.f32 %v2381_v5, %v1220_v40  ;;  %v1223_v45 = vadd.f32 %v1917_v39, %v1222_v42  ;;  %v1224_v46 = vpop.f32.mrb[47].mxu1 }
 0x15f   : > { %1518 = vst.msk [vmem:[%s2396_s19 + $0x54] sm:$0xf] %vm1496_vm2, %v1819_v43  ;;  %v1326_v47 = vadd.f32 %v2386_v8, %v1287_v44  ;;  %v1288_v48 = vmul.f32 %v2381_v5, %v1223_v45  ;;  %v1918_v49 = vpop.f32.mrb[48].mxu0 }
 0x160   : > { %v1919_v50 = vpop.f32.mrb[49].mxu0 }
 0x161   : > { %v1358_v51 = vmax.f32 %v1326_v47, 0.0  ;;  %v1327_v52 = vadd.f32 %v2386_v8, %v1288_v48  ;;  %v1920_v53 = vadd.f32 %v1919_v50, %v1918_v49  ;;  %v1921_v54 = vpop.f32.mrb[50].mxu0 }
 0x162   : > { %v1922_v55 = vpop.f32.mrb[51].mxu0  ;;  %v1227_v56 = vpop.f32.mrb[48].mxu1 }
 0x163   : > { %v1820_v57 = vpack.c.bf16 %v1358_v51, %v1358_v51  ;;  %v1359_v58 = vmax.f32 %v1327_v52, 0.0  ;;  %v1923_v59 = vadd.f32 %v1922_v55, %v1921_v54  ;;  %v1228_v60 = vadd.f32 %v1920_v53, %v1227_v56  ;;  %v1229_v61 = vpop.f32.mrb[49].mxu1 }
 0x164   : > { %v1230_v62 = vpop.f32.mrb[50].mxu1 }
 0x165   : > { %1519 = vst.msk [vmem:[%s2396_s19 + $0x58] sm:$0xf] %vm1496_vm2, %v1820_v57  ;;  %v1821_v63 = vpack.c.bf16 %v1359_v58, %v1359_v58  ;;  %v1289_v0 = vmul.f32 %v2381_v5, %v1228_v60  ;;  %v1231_v1 = vadd.f32 %v1923_v59, %v1230_v62  ;;  %v1232_v3 = vpop.f32.mrb[51].mxu1 }
 0x167   : > { %1520 = vst.msk [vmem:[%s2396_s19 + $0x5c] sm:$0xf] %vm1496_vm2, %v1821_v63  ;;  %v1328_v4 = vadd.f32 %v2386_v8, %v1289_v0  ;;  %v1290_v6 = vmul.f32 %v2381_v5, %v1231_v1  ;;  %v1924_v7 = vpop.f32.mrb[52].mxu0 }
 0x168   : > { %v1925_v2 = vpop.f32.mrb[53].mxu0 }
 0x169   : > { %v1360_v9 = vmax.f32 %v1328_v4, 0.0  ;;  %v1329_v10 = vadd.f32 %v2386_v8, %v1290_v6  ;;  %v1926_v11 = vadd.f32 %v1925_v2, %v1924_v7  ;;  %v1927_v12 = vpop.f32.mrb[54].mxu0 }
 0x16a   : > { %v1928_v13 = vpop.f32.mrb[55].mxu0  ;;  %v1235_v14 = vpop.f32.mrb[52].mxu1 }
 0x16b   : > { %v1822_v15 = vpack.c.bf16 %v1360_v9, %v1360_v9  ;;  %v1361_v16 = vmax.f32 %v1329_v10, 0.0  ;;  %v1929_v17 = vadd.f32 %v1928_v13, %v1927_v12  ;;  %v1236_v18 = vadd.f32 %v1926_v11, %v1235_v14  ;;  %v1237_v19 = vpop.f32.mrb[53].mxu1 }
 0x16c   : > { %v1238_v20 = vpop.f32.mrb[54].mxu1 }
 0x16d   : > { %1521 = vst.msk [vmem:[%s2396_s19 + $0x60] sm:$0xf] %vm1496_vm2, %v1822_v15  ;;  %v1823_v21 = vpack.c.bf16 %v1361_v16, %v1361_v16  ;;  %v1291_v22 = vmul.f32 %v2381_v5, %v1236_v18  ;;  %v1239_v23 = vadd.f32 %v1929_v17, %v1238_v20  ;;  %v1240_v24 = vpop.f32.mrb[55].mxu1 }
 0x16f   : > { %1522 = vst.msk [vmem:[%s2396_s19 + $0x64] sm:$0xf] %vm1496_vm2, %v1823_v21  ;;  %v1330_v25 = vadd.f32 %v2386_v8, %v1291_v22  ;;  %v1292_v26 = vmul.f32 %v2381_v5, %v1239_v23  ;;  %v1930_v27 = vpop.f32.mrb[56].mxu0 }
 0x170   : > { %v1931_v28 = vpop.f32.mrb[57].mxu0 }
 0x171   : > { %v1362_v29 = vmax.f32 %v1330_v25, 0.0  ;;  %v1331_v30 = vadd.f32 %v2386_v8, %v1292_v26  ;;  %v1932_v31 = vadd.f32 %v1931_v28, %v1930_v27  ;;  %v1933_v32 = vpop.f32.mrb[58].mxu0 }
 0x172   : > { %v1934_v33 = vpop.f32.mrb[59].mxu0  ;;  %v1243_v34 = vpop.f32.mrb[56].mxu1 }
 0x173   : > { %v1824_v35 = vpack.c.bf16 %v1362_v29, %v1362_v29  ;;  %v1363_v36 = vmax.f32 %v1331_v30, 0.0  ;;  %v1935_v37 = vadd.f32 %v1934_v33, %v1933_v32  ;;  %v1244_v38 = vadd.f32 %v1932_v31, %v1243_v34  ;;  %v1245_v39 = vpop.f32.mrb[57].mxu1 }
 0x174   : > { %v1246_v40 = vpop.f32.mrb[58].mxu1 }
 0x175   : > { %1523 = vst.msk [vmem:[%s2396_s19 + $0x68] sm:$0xf] %vm1496_vm2, %v1824_v35  ;;  %v1825_v41 = vpack.c.bf16 %v1363_v36, %v1363_v36  ;;  %v1293_v42 = vmul.f32 %v2381_v5, %v1244_v38  ;;  %v1247_v43 = vadd.f32 %v1935_v37, %v1246_v40  ;;  %v1248_v44 = vpop.f32.mrb[59].mxu1 }
 0x177   : > { %1524 = vst.msk [vmem:[%s2396_s19 + $0x6c] sm:$0xf] %vm1496_vm2, %v1825_v41  ;;  %v1332_v45 = vadd.f32 %v2386_v8, %v1293_v42  ;;  %v1294_v46 = vmul.f32 %v2381_v5, %v1247_v43  ;;  %v1936_v47 = vpop.f32.mrb[60].mxu0 }
 0x178   : > { %v1937_v48 = vpop.f32.mrb[61].mxu0 }
 0x179   : > { %v1364_v49 = vmax.f32 %v1332_v45, 0.0  ;;  %v1333_v50 = vadd.f32 %v2386_v8, %v1294_v46  ;;  %v1938_v51 = vadd.f32 %v1937_v48, %v1936_v47  ;;  %v1939_v52 = vpop.f32.mrb[62].mxu0 }
 0x17a   : > { %v1940_v53 = vpop.f32.mrb[63].mxu0  ;;  %v1251_v54 = vpop.f32.mrb[60].mxu1 }
 0x17b   : > { %v1826_v55 = vpack.c.bf16 %v1364_v49, %v1364_v49  ;;  %v1365_v56 = vmax.f32 %v1333_v50, 0.0  ;;  %v1941_v57 = vadd.f32 %v1940_v53, %v1939_v52  ;;  %v1252_v58 = vadd.f32 %v1938_v51, %v1251_v54  ;;  %v1253_v59 = vpop.f32.mrb[61].mxu1 }
 0x17c   : > { %v1254_v60 = vpop.f32.mrb[62].mxu1 }
 0x17d   : > { %1525 = vst.msk [vmem:[%s2396_s19 + $0x70] sm:$0xf] %vm1496_vm2, %v1826_v55  ;;  %v1827_v61 = vpack.c.bf16 %v1365_v56, %v1365_v56  ;;  %v1295_v62 = vmul.f32 %v2381_v5, %v1252_v58  ;;  %v1255_v63 = vadd.f32 %v1941_v57, %v1254_v60  ;;  %v1256_v0 = vpop.f32.mrb[63].mxu1 }
 0x17f   : > { %1526 = vst.msk [vmem:[%s2396_s19 + $0x74] sm:$0xf] %vm1496_vm2, %v1827_v61  ;;  %v1334_v1 = vadd.f32 %v2386_v8, %v1295_v62  ;;  %v1296_v3 = vmul.f32 %v2381_v5, %v1255_v63 }
 0x181   : > { %v1366_v4 = vmax.f32 %v1334_v1, 0.0  ;;  %v1335_v6 = vadd.f32 %v2386_v8, %v1296_v3 }
 0x183   : > { %v1828_v7 = vpack.c.bf16 %v1366_v4, %v1366_v4  ;;  %v1367_v2 = vmax.f32 %v1335_v6, 0.0 }
 0x185   : > { %1527 = vst.msk [vmem:[%s2396_s19 + $0x78] sm:$0xf] %vm1496_vm2, %v1828_v7  ;;  %v1829_v9 = vpack.c.bf16 %v1367_v2, %v1367_v2 }
 0x187   : > { %1528 = vst.msk [vmem:[%s2396_s19 + $0x7c] sm:$0xf] %vm1496_vm2, %v1829_v9 }
 0x188 PF: > { %s14_s17 = sadd.s32 1, %s2085_s17   ;;  %s2536_s15 = smov %s2081_s16 }
 0x189   : > { %p11_p5 = scmp.ge.s32.totalorder %s14_s17, 10   ;;  %s2537_s16 = smov %s2539_s18 }
 0x18b   :  { %13 = sbr.rel (!%p11_p5) target bundleno = 2 (0x2), region = 75 }

</bundles_post_ra>
